<compile_context>
chip_gen: v5e
topology: v5e:2x2
jax: 0.10.0
libtpu: 0.0.40
codegen_flags: <defaults>
</compile_context>

<pallas_src>
import jax
import jax.numpy as jnp
from jax.experimental import pallas as pl
from jax.experimental.pallas import tpu as pltpu


_MAX_TILE_B = 2048       # max batch rows per grid step (amortizes per-step overhead)
_SPLIT_THRESHOLD = 512   # above this batch, force >=2 grid steps (v7x dual-TC)


def _round_up(x, m):
    return ((x + m - 1) // m) * m


def _choose_tile_b(batch):
    """Pick the batch tile: big (overhead amortization), >=2 steps when batch is large."""
    if batch <= _SPLIT_THRESHOLD:
        return _round_up(batch, 8)                      # single grid step
    half = _round_up((batch + 1) // 2, 8)               # at least 2 steps for v7x
    return min(_MAX_TILE_B, half)


def _make_mlp_kernel(num_layers):
    """Kernel args: (z, w0, b0, ..., w_{L-1}, b_{L-1}, wf_row, bf, out)."""

    def kernel(*refs):
        z_ref = refs[0]
        out_ref = refs[-1]

        # z arrives as f32 straight from HBM; cast to bf16 once, in-kernel.
        h = z_ref[...].astype(jnp.bfloat16)               # [tile_b, in]
        idx = 1
        for _ in range(num_layers):
            w = refs[idx][...]                            # bf16 [in, out]  (MXU input)
            b = refs[idx + 1][...]                        # f32  [1, out]
            idx += 2
            acc = jnp.dot(h, w, preferred_element_type=jnp.float32) + b   # f32 acc
            # ReLU / bias-add in f32 (v5e VPU has no bf16); bf16 only for the next MXU.
            h = jnp.maximum(acc, 0.0).astype(jnp.bfloat16)

        # Final Linear(in_features -> 1): VPU multiply + lane reduction (XLU slot is
        # idle here), avoiding an N=1 MXU push/pop.  Result is the useful column only.
        wf = refs[idx][...].astype(jnp.float32)           # [1, in] row
        bf = refs[idx + 1][...]                           # [1, 1]  f32
        final = jnp.sum(h.astype(jnp.float32) * wf, axis=-1, keepdims=True) + bf
        out_ref[...] = final.astype(out_ref.dtype)        # [tile_b, 1] — no 128x slab

    return kernel


def init_adversary_z_params(key, num_filters, num_layers, z_size):
    """Matches the torch init: W ~ N(0, 0.0099999), b = 0.

    Hidden weights stored pre-transposed [in, out] in bf16 (MXU-native);
    biases in f32. Final weight stored as a [1, in] row in bf16, bias f32.
    """
    params = []
    in_features = z_size
    for _ in range(num_layers):
        key, wk = jax.random.split(key)
        w = jax.random.normal(wk, (in_features, num_filters), jnp.float32) * 0.0099999
        b = jnp.zeros((1, num_filters), jnp.float32)
        params.append((w.astype(jnp.bfloat16), b))
        in_features = num_filters
    key, wk = jax.random.split(key)
    wf = jax.random.normal(wk, (1, in_features), jnp.float32) * 0.0099999
    bf = jnp.zeros((1, 1), jnp.float32)
    params.append((wf.astype(jnp.bfloat16), bf))
    return params


def adversary_z_forward(z, params):
    """Full MLP forward in one batch-tiled Pallas kernel.

    z:      [batch, z_size] float32 (passed to the kernel as-is; cast in-kernel)
    params: [(W[in,out] bf16, b[1,out] f32)] * num_layers + [(wf[1,in] bf16, bf[1,1] f32)]
    returns [batch, 1] float32
    """
    num_layers = len(params) - 1
    batch, z_size = z.shape
    tile_b = _choose_tile_b(batch)
    grid = (pl.cdiv(batch, tile_b),)

    flat_args = [z]
    in_specs = [pl.BlockSpec((tile_b, z_size), lambda i: (i, 0))]
    for w, b in params:
        flat_args.append(w)
        flat_args.append(b)
        # Weights/biases stay resident: full-array blocks, constant index_map.
        in_specs.append(pl.BlockSpec(w.shape, lambda i: (0, 0)))
        in_specs.append(pl.BlockSpec(b.shape, lambda i: (0, 0)))

    out_spec = pl.BlockSpec((tile_b, 1), lambda i: (i, 0))

    # Advisory cost estimate for XLA's scheduler.
    flops = 2 * batch * (sum(int(w.shape[0]) * int(w.shape[1]) for w, _ in params[:-1])
                         + int(params[-1][0].shape[-1]))
    bytes_accessed = (z.size * z.dtype.itemsize
                      + sum(w.size * w.dtype.itemsize + b.size * b.dtype.itemsize
                            for w, b in params)
                      + batch * 4)

    out = pl.pallas_call(
        _make_mlp_kernel(num_layers),
        out_shape=jax.ShapeDtypeStruct((batch, 1), jnp.float32),
        grid=grid,
        in_specs=in_specs,
        out_specs=out_spec,
        compiler_params=pltpu.CompilerParams(dimension_semantics=("parallel",)),
        cost_estimate=pl.CostEstimate(
            flops=flops, transcendentals=0, bytes_accessed=bytes_accessed),
    )(*flat_args)

    return out


def _reference_forward(z, params):
    """Pure-JAX reference mimicking the kernel's dtype flow (bf16 MXU, f32 acc)."""
    h = z.astype(jnp.bfloat16)
    for w, b in params[:-1]:
        acc = jnp.dot(h, w, preferred_element_type=jnp.float32) + b
        h = jnp.maximum(acc, 0.0).astype(jnp.bfloat16)
    wf, bf = params[-1]
    return jnp.sum(h.astype(jnp.float32) * wf.astype(jnp.float32),
                   axis=-1, keepdims=True) + bf


if __name__ == "__main__":
    # Small shapes consistent with the module's forward on latent vectors.
    z_size = 32
    num_filters = 64
    num_layers = 3

    key = jax.random.PRNGKey(0)
    key, zk, pk, zk2 = jax.random.split(key, 4)
    params = init_adversary_z_params(pk, num_filters, num_layers, z_size)

    # 1) Tiny batch: single grid step, exact-fit tile.
    batch = 8
    z = jax.random.normal(zk, (batch, z_size), jnp.float32)
    out = jax.block_until_ready(adversary_z_forward(z, params))
    ref = _reference_forward(z, params)
    assert out.shape == (batch, 1), out.shape
    assert jnp.allclose(out, ref, atol=1e-5, rtol=1e-2), (out, ref)

    # 2) Larger batch: multi-step grid with a ragged (partial) last tile.
    batch2 = 1000
    z2 = jax.random.normal(zk2, (batch2, z_size), jnp.float32)
    out2 = jax.block_until_ready(adversary_z_forward(z2, params))
    ref2 = _reference_forward(z2, params)
    assert out2.shape == (batch2, 1), out2.shape
    assert jnp.allclose(out2, ref2, atol=1e-5, rtol=1e-2)

    print("KERNEL_OK")
</pallas_src>

<mosaic_0001>
module attributes {stable_mosaic.version = 11 : i64} {
  func.func @kernel(%arg0: i32, %arg1: memref<8x32xf32, #tpu.memory_space<vmem>>, %arg2: memref<32x64xbf16, #tpu.memory_space<vmem>>, %arg3: memref<1x64xf32, #tpu.memory_space<vmem>>, %arg4: memref<64x64xbf16, #tpu.memory_space<vmem>>, %arg5: memref<1x64xf32, #tpu.memory_space<vmem>>, %arg6: memref<64x64xbf16, #tpu.memory_space<vmem>>, %arg7: memref<1x64xf32, #tpu.memory_space<vmem>>, %arg8: memref<1x64xbf16, #tpu.memory_space<vmem>>, %arg9: memref<1x1xf32, #tpu.memory_space<vmem>>, %arg10: memref<8x1xf32, #tpu.memory_space<vmem>>) attributes {dimension_semantics = [#tpu.dimension_semantics<parallel>], iteration_bounds = array<i64: 1>, scalar_prefetch = 0 : i64, scratch_operands = 0 : i64, tpu.core_type = #tpu.core_type<tc>, window_params = [{transform_indices = @transform_0, window_bounds = array<i64: 8, 32>}, {pipeline_mode = #tpu.pipeline_mode<synchronous>, transform_indices = @transform_1, window_bounds = array<i64: 32, 64>}, {pipeline_mode = #tpu.pipeline_mode<synchronous>, transform_indices = @transform_2, window_bounds = array<i64: 1, 64>}, {pipeline_mode = #tpu.pipeline_mode<synchronous>, transform_indices = @transform_3, window_bounds = array<i64: 64, 64>}, {pipeline_mode = #tpu.pipeline_mode<synchronous>, transform_indices = @transform_4, window_bounds = array<i64: 1, 64>}, {pipeline_mode = #tpu.pipeline_mode<synchronous>, transform_indices = @transform_5, window_bounds = array<i64: 64, 64>}, {pipeline_mode = #tpu.pipeline_mode<synchronous>, transform_indices = @transform_6, window_bounds = array<i64: 1, 64>}, {pipeline_mode = #tpu.pipeline_mode<synchronous>, transform_indices = @transform_7, window_bounds = array<i64: 1, 64>}, {pipeline_mode = #tpu.pipeline_mode<synchronous>, transform_indices = @transform_8, window_bounds = array<i64: 1, 1>}, {transform_indices = @transform_9, window_bounds = array<i64: 8, 1>}]} {
    %c0 = arith.constant 0 : index
    %c0_0 = arith.constant 0 : index
    %0 = vector.load %arg1[%c0, %c0_0] : memref<8x32xf32, #tpu.memory_space<vmem>>, vector<8x32xf32>
    %1 = arith.truncf %0 : vector<8x32xf32> to vector<8x32xbf16>
    %c0_1 = arith.constant 0 : index
    %c0_2 = arith.constant 0 : index
    %2 = vector.load %arg2[%c0_1, %c0_2] : memref<32x64xbf16, #tpu.memory_space<vmem>>, vector<32x64xbf16>
    %c0_3 = arith.constant 0 : index
    %c0_4 = arith.constant 0 : index
    %3 = vector.load %arg3[%c0_3, %c0_4] : memref<1x64xf32, #tpu.memory_space<vmem>>, vector<1x64xf32>
    %cst = arith.constant dense<0.000000e+00> : vector<8x64xf32>
    %4 = tpu.matmul %1, %2, %cst {dimension_numbers = #tpu.dot_dimension_numbers<[1], [0], [0], [1], [0, 0, 1, 1], [], []>} : vector<8x32xbf16>, vector<32x64xbf16>, vector<8x64xf32> -> vector<8x64xf32>
    %5 = vector.broadcast %3 : vector<1x64xf32> to vector<8x64xf32>
    %6 = arith.addf %4, %5 : vector<8x64xf32>
    %cst_5 = arith.constant 0.000000e+00 : f32
    %7 = vector.broadcast %cst_5 : f32 to vector<8x64xf32>
    %8 = arith.maximumf %6, %7 : vector<8x64xf32>
    %9 = arith.truncf %8 : vector<8x64xf32> to vector<8x64xbf16>
    %c0_6 = arith.constant 0 : index
    %c0_7 = arith.constant 0 : index
    %10 = vector.load %arg4[%c0_6, %c0_7] : memref<64x64xbf16, #tpu.memory_space<vmem>>, vector<64x64xbf16>
    %c0_8 = arith.constant 0 : index
    %c0_9 = arith.constant 0 : index
    %11 = vector.load %arg5[%c0_8, %c0_9] : memref<1x64xf32, #tpu.memory_space<vmem>>, vector<1x64xf32>
    %cst_10 = arith.constant dense<0.000000e+00> : vector<8x64xf32>
    %12 = tpu.matmul %9, %10, %cst_10 {dimension_numbers = #tpu.dot_dimension_numbers<[1], [0], [0], [1], [0, 0, 1, 1], [], []>} : vector<8x64xbf16>, vector<64x64xbf16>, vector<8x64xf32> -> vector<8x64xf32>
    %13 = vector.broadcast %11 : vector<1x64xf32> to vector<8x64xf32>
    %14 = arith.addf %12, %13 : vector<8x64xf32>
    %cst_11 = arith.constant 0.000000e+00 : f32
    %15 = vector.broadcast %cst_11 : f32 to vector<8x64xf32>
    %16 = arith.maximumf %14, %15 : vector<8x64xf32>
    %17 = arith.truncf %16 : vector<8x64xf32> to vector<8x64xbf16>
    %c0_12 = arith.constant 0 : index
    %c0_13 = arith.constant 0 : index
    %18 = vector.load %arg6[%c0_12, %c0_13] : memref<64x64xbf16, #tpu.memory_space<vmem>>, vector<64x64xbf16>
    %c0_14 = arith.constant 0 : index
    %c0_15 = arith.constant 0 : index
    %19 = vector.load %arg7[%c0_14, %c0_15] : memref<1x64xf32, #tpu.memory_space<vmem>>, vector<1x64xf32>
    %cst_16 = arith.constant dense<0.000000e+00> : vector<8x64xf32>
    %20 = tpu.matmul %17, %18, %cst_16 {dimension_numbers = #tpu.dot_dimension_numbers<[1], [0], [0], [1], [0, 0, 1, 1], [], []>} : vector<8x64xbf16>, vector<64x64xbf16>, vector<8x64xf32> -> vector<8x64xf32>
    %21 = vector.broadcast %19 : vector<1x64xf32> to vector<8x64xf32>
    %22 = arith.addf %20, %21 : vector<8x64xf32>
    %cst_17 = arith.constant 0.000000e+00 : f32
    %23 = vector.broadcast %cst_17 : f32 to vector<8x64xf32>
    %24 = arith.maximumf %22, %23 : vector<8x64xf32>
    %25 = arith.truncf %24 : vector<8x64xf32> to vector<8x64xbf16>
    %c0_18 = arith.constant 0 : index
    %c0_19 = arith.constant 0 : index
    %26 = vector.load %arg8[%c0_18, %c0_19] : memref<1x64xbf16, #tpu.memory_space<vmem>>, vector<1x64xbf16>
    %27 = arith.extf %26 : vector<1x64xbf16> to vector<1x64xf32>
    %c0_20 = arith.constant 0 : index
    %c0_21 = arith.constant 0 : index
    %28 = vector.load %arg9[%c0_20, %c0_21] : memref<1x1xf32, #tpu.memory_space<vmem>>, vector<1x1xf32>
    %29 = arith.extf %25 : vector<8x64xbf16> to vector<8x64xf32>
    %30 = vector.broadcast %27 : vector<1x64xf32> to vector<8x64xf32>
    %31 = arith.mulf %29, %30 : vector<8x64xf32>
    %cst_22 = arith.constant dense<0.000000e+00> : vector<8xf32>
    %32 = vector.multi_reduction <add>, %31, %cst_22 [1] : vector<8x64xf32> to vector<8xf32>
    %33 = vector.shape_cast %32 : vector<8xf32> to vector<8x1xf32>
    %34 = vector.broadcast %28 : vector<1x1xf32> to vector<8x1xf32>
    %35 = arith.addf %33, %34 : vector<8x1xf32>
    %c0_23 = arith.constant 0 : index
    %c0_24 = arith.constant 0 : index
    %36 = vector.load %arg10[%c0_23, %c0_24] : memref<8x1xf32, #tpu.memory_space<vmem>>, vector<8x1xf32>
    tpu.vector_store %arg10[%c0_23, %c0_24], %35 {strides = array<i32>} : memref<8x1xf32, #tpu.memory_space<vmem>>, vector<8x1xf32>,
    return
  }
  func.func @transform_0(%arg0: i32) -> (i32, i32) {
    %c0_i32 = arith.constant 0 : i32
    %c0_i32_0 = arith.constant 0 : i32
    return %arg0, %c0_i32 : i32, i32
  }
  func.func @transform_1(%arg0: i32) -> (i32, i32) {
    %c0_i32 = arith.constant 0 : i32
    %c0_i32_0 = arith.constant 0 : i32
    %c0_i32_1 = arith.constant 0 : i32
    return %c0_i32, %c0_i32_0 : i32, i32
  }
  func.func @transform_2(%arg0: i32) -> (i32, i32) {
    %c0_i32 = arith.constant 0 : i32
    %c0_i32_0 = arith.constant 0 : i32
    %c0_i32_1 = arith.constant 0 : i32
    return %c0_i32, %c0_i32_0 : i32, i32
  }
  func.func @transform_3(%arg0: i32) -> (i32, i32) {
    %c0_i32 = arith.constant 0 : i32
    %c0_i32_0 = arith.constant 0 : i32
    %c0_i32_1 = arith.constant 0 : i32
    return %c0_i32, %c0_i32_0 : i32, i32
  }
  func.func @transform_4(%arg0: i32) -> (i32, i32) {
    %c0_i32 = arith.constant 0 : i32
    %c0_i32_0 = arith.constant 0 : i32
    %c0_i32_1 = arith.constant 0 : i32
    return %c0_i32, %c0_i32_0 : i32, i32
  }
  func.func @transform_5(%arg0: i32) -> (i32, i32) {
    %c0_i32 = arith.constant 0 : i32
    %c0_i32_0 = arith.constant 0 : i32
    %c0_i32_1 = arith.constant 0 : i32
    return %c0_i32, %c0_i32_0 : i32, i32
  }
  func.func @transform_6(%arg0: i32) -> (i32, i32) {
    %c0_i32 = arith.constant 0 : i32
    %c0_i32_0 = arith.constant 0 : i32
    %c0_i32_1 = arith.constant 0 : i32
    return %c0_i32, %c0_i32_0 : i32, i32
  }
  func.func @transform_7(%arg0: i32) -> (i32, i32) {
    %c0_i32 = arith.constant 0 : i32
    %c0_i32_0 = arith.constant 0 : i32
    %c0_i32_1 = arith.constant 0 : i32
    return %c0_i32, %c0_i32_0 : i32, i32
  }
  func.func @transform_8(%arg0: i32) -> (i32, i32) {
    %c0_i32 = arith.constant 0 : i32
    %c0_i32_0 = arith.constant 0 : i32
    %c0_i32_1 = arith.constant 0 : i32
    return %c0_i32, %c0_i32_0 : i32, i32
  }
  func.func @transform_9(%arg0: i32) -> (i32, i32) {
    %c0_i32 = arith.constant 0 : i32
    %c0_i32_0 = arith.constant 0 : i32
    return %arg0, %c0_i32 : i32, i32
  }
}

</mosaic_0001>

<bundles_post_ra>
// kernel: tpu_custom_call.1
= control target key start
LH: loop header
LB: loop body
LE: loop exit
PB: predicated region body
PF: predicated region fallthrough
CT: control target
= control target key end

     0   :  { %s522_s0 = inlined_call_operand.hbm [shape: f32[8,32], index: 0, kind: input, shape index: {}]   ;;  %s523_s1 = inlined_call_operand.hbm [shape: bf16[32,64], index: 1, kind: input, shape index: {}]   ;;  %s524_s2 = inlined_call_operand.vmem [shape: f32[1,64], index: 2, kind: input, shape index: {}]   ;;  %s525_s3 = inlined_call_operand.hbm [shape: bf16[64,64], index: 3, kind: input, shape index: {}]   ;;  %s526_s4 = inlined_call_operand.vmem [shape: f32[1,64], index: 4, kind: input, shape index: {}]   ;;  %s527_s5 = inlined_call_operand.hbm [shape: bf16[64,64], index: 5, kind: input, shape index: {}]   ;;  %s528_s6 = inlined_call_operand.vmem [shape: f32[1,64], index: 6, kind: input, shape index: {}]   ;;  %s529_s7 = inlined_call_operand.vmem [shape: bf16[1,64], index: 7, kind: input, shape index: {}]   ;;  %s530_s8 = inlined_call_operand.<no memory space> [shape: f32[1,1], index: 8, kind: input, shape index: {}]   ;;  %s531_s9 = inlined_call_operand.vmem [shape: f32[8,1], index: 9, kind: output, shape index: {}]  }
   0x1   :  { %v14_v0 = vstv %s530_s8 }
   0x2   :  { %15 = vst [vmem:[#allocation2] sm:$0x1] %v14_v0 }
   0x3   :  { %16 = vsyncpa [#allocation4], 0 }
   0x4   :  { %17 = vsyncpa [#allocation6], 0  ;;  %s34_s13 = sshll.u32 %s523_s1, 4  ;;  %s35_s13 = int_to_ptr.hbm [resolvable:$true] %s34_s13 }
   0x5   :  { %18 = vsyncpa [#allocation9], 0  ;;  %s433_s14 = smov [#allocation5]   ;;  %s24_s18 = sshll.u32 %s522_s0, 4  ;;  %s25_s18 = int_to_ptr.hbm [resolvable:$true] %s24_s18 }
   0x6   :  { %s36_s15 = sshll.u32 %s433_s14, 4  ;;  %s434_s19 = smov 64   ;;  %s37_s15 = int_to_ptr.vmem [resolvable:$true] %s36_s15 }
   0x7   :  { %s435_s20 = smov 4   ;;  %s436_s8 = smov [#allocation3]  }
   0x8   :  { %42 = dma.hbm_to_vmem [thread:$0]  %s35_s13, 256, %s37_s15, [#allocation6], %s434_s19, %s434_s19, %s435_s20  }
   0x9   :  { %s26_s21 = sshll.u32 %s436_s8, 4  ;;  %s49_s24 = sshll.u32 %s525_s3, 4  ;;  %s27_s21 = int_to_ptr.vmem [resolvable:$true] %s26_s21  ;;  %s50_s24 = int_to_ptr.hbm [resolvable:$true] %s49_s24 }
   0xa   :  { %29 = dma.hbm_to_vmem [thread:$0]  %s25_s18, 128, %s27_s21, [#allocation4]  }
   0xb   :  { %s64_s26 = sshll.u32 %s527_s5, 4  ;;  %s437_s27 = smov [#allocation7]   ;;  %s65_s26 = int_to_ptr.hbm [resolvable:$true] %s64_s26 }
   0xc   :  { %s51_s28 = sshll.u32 %s437_s27, 4  ;;  %s438_s0 = smov [#allocation8]   ;;  %s52_s28 = int_to_ptr.vmem [resolvable:$true] %s51_s28 }
   0xd   :  { %57 = dma.hbm_to_vmem [thread:$0]  %s50_s24, 512, %s52_s28, [#allocation6], %s434_s19, %s434_s19, %s435_s20  }
   0xe   :  { %s66_s29 = sshll.u32 %s438_s0, 4  ;;  %s67_s29 = int_to_ptr.vmem [resolvable:$true] %s66_s29 }
   0xf   :  { %72 = dma.hbm_to_vmem [thread:$0]  %s65_s26, 512, %s67_s29, [#allocation9], %s434_s19, %s434_s19, %s435_s20  }
  0x10   :  { %427 = dma.done.wait [#allocation4], 128  }
  0x11   :  { %428 = vsyncadd [#allocation4], 4294967168 }
  0x12   :  { %429 = dma.done.wait [#allocation6], 768  }
  0x13   :  { %430 = vsyncadd [#allocation6], 4294966528 }
  0x14   :  { %431 = dma.done.wait [#allocation9], 512  }
  0x15   :  { %432 = vsyncadd [#allocation9], 4294966784  ;;  %v312_v1 = vld [vmem:[#allocation5 + $0x8] sm:$0xff]  ;;  %v311_v2 = vld [vmem:[#allocation5] sm:$0xff]  ;;  %vm118_vm0 = vcmask 261120   ;;  %vm173_vm1 = vcmask 523264  }
  0x16   :  { %v316_v3 = vld [vmem:[#allocation7 + $0x18] sm:$0xff]  ;;  %128 = vmatpush.bf16.msra.mxu0 %v312_v1  ;;  %v96_v4 = vld [vmem:[#allocation3] sm:$0xff]  ;;  %v315_v5 = vld [vmem:[#allocation7 + $0x10] sm:$0xff]  ;;  %vm259_vm2 = vcmask 7168  }
  0x17   :  { %181 = vmatpush.bf16.msra.mxu1 %v316_v3  ;;  %v97_v6 = vpack.c.bf16 %v96_v4, %v96_v4  ;;  %v314_v7 = vld [vmem:[#allocation7 + $0x8] sm:$0xff]  ;;  %v313_v8 = vld [vmem:[#allocation7] sm:$0xff]  ;;  %v320_v9 = vld [vmem:[#allocation8 + $0x18] sm:$0xff] }
  0x18   :  { %235 = vmatpush.bf16.msra.mxu2 %v320_v9  ;;  %v319_v10 = vld [vmem:[#allocation8 + $0x10] sm:$0xff]  ;;  %v327_v11 = vld [vmem:[%s524_s2] ss:$0 sm:$0xff]  ;;  %v318_v17 = vld [vmem:[#allocation8 + $0x8] sm:$0xff] }
  0x19   :  { %v317_v18 = vld [vmem:[#allocation8] sm:$0xff] }
  0x1a   :  { %129 = vmatpush.bf16.msra.mxu0 %v311_v2  ;;  %v328_v19 = vld [vmem:[%s526_s4] ss:$0 sm:$0xff] }
  0x1b   :  { %182 = vmatpush.bf16.msra.mxu1 %v315_v5  ;;  %v329_v25 = vld [vmem:[%s528_s6] ss:$0 sm:$0xff] }
  0x1c   :  { %236 = vmatpush.bf16.msra.mxu2 %v319_v10  ;;  %v246_v26 = vld [vmem:[%s529_s7] sm:$0x1] }
  0x1d   :  { %276 = vmatmul.msk.bf16.vlgmr.msra.gmra.mxu0 %vm118_vm0, %v97_v6  ;;  %v247_v29 = vunpack.c.l.bf16 %v246_v26  ;;  %v330_v37 = vld [vmem:[#allocation2] ss:$0 sm:$0xff] }
  0x1f   :  { %183 = vmatpush.bf16.msra.mxu1 %v314_v7  ;;  %v250_v32 = vperm.slane %v247_v29, 0 }
  0x20   :  { %237 = vmatpush.bf16.msra.mxu2 %v318_v17 }
  0x23   :  { %184 = vmatpush.bf16.msra.mxu1 %v313_v8 }
  0x24   :  { %238 = vmatpush.bf16.msra.mxu2 %v317_v18 }
  0x9a   :  { %v131_v12 = vpop.f32.mrf.mxu0 }
  0x9b   :  { %v132_v13 = vadd.f32 %v327_v11, %v131_v12 }
  0x9d   :  { %v135_v14 = vmax.f32 %v132_v13, 0.0 }
  0x9f   :  { %v136_v15 = vpack.c.bf16 %v135_v14, %v135_v14 }
  0xa1   :  { %293 = vmatmul.msk.bf16.vlgmr.msra.gmra.mxu1 %vm173_vm1, %v136_v15 }
  0xa2   :  { %v133_v16 = vpop.f32.mrf.mxu0 }
 0x11e   :  { %v186_v20 = vpop.f32.mrf.mxu1 }
 0x11f   :  { %v187_v21 = vadd.f32 %v328_v19, %v186_v20 }
 0x121   :  { %v190_v22 = vmax.f32 %v187_v21, 0.0 }
 0x123   :  { %v191_v23 = vpack.c.bf16 %v190_v22, %v190_v22 }
 0x125   :  { %310 = vmatmul.msk.bf16.vlgmr.msra.gmra.mxu2 %vm173_vm1, %v191_v23 }
 0x126   :  { %v188_v24 = vpop.f32.mrf.mxu1 }
 0x1a8   :  { %v240_v27 = vpop.f32.mrf.mxu2 }
 0x1a9   :  { %v241_v28 = vadd.f32 %v329_v25, %v240_v27 }
 0x1ab   :  { %v244_v30 = vmax.f32 %v241_v28, 0.0 }
 0x1ad   :  { %v245_v31 = vpack.c.bf16 %v244_v30, %v244_v30 }
 0x1af   :  { %v249_v33 = vunpack.c.l.bf16 %v245_v31 }
 0x1b0   :  { %v242_v34 = vpop.f32.mrf.mxu2 }
 0x1b1   :  { %v251_v35 = vmul.f32 %v250_v32, %v249_v33 }
 0x1b3   :  { %v252_v36 = vsel %vm173_vm1, %v251_v35, 0.0 }
 0x1b4   :  { %253 = vadd.xlane.f32.xlu0 %v252_v36 }
 0x227   :  { %v254_v38 = vpop.xlane.xlu0 %253 }
 0x228   :  { %v258_v39 = vadd.f32 %v330_v37, %v254_v38 }
 0x22a   :  { %260 = vst.msk [vmem:[%s531_s9] sm:$0xff] %vm259_vm2, %v258_v39 }
 0x22b   :  { %265 = vsyncpa [#allocation4], 1 }
 0x22c   :  { %266 = vsyncpa [#allocation6], 1 }
 0x22d   :  { %267 = vsyncpa [#allocation9], 1 }

</bundles_post_ra>
